<compile_context>
chip_gen: v5e
topology: v5e:2x2
jax: 0.10.0
libtpu: 0.0.40
codegen_flags: <defaults>
</compile_context>

<pallas_src>
import jax
import jax.numpy as jnp
from jax import lax
from jax.experimental import pallas as pl
from jax.experimental.pallas import tpu as pltpu


# ----------------------------------------------------------------------------- kernel
def _nutrition_kernel(x_ref, w1_ref, b1_ref, w2_ref, b2_ref, wh_ref, bh_ref, out_ref):
    # x tile: (TILE, input_dim) bf16 (cast in the wrapper).  Weights are BN-folded bf16,
    # biases f32.  Output tile: (2, TILE) f32, lane-dense along the batch dimension.
    x = x_ref[...]

    # block 0: (BN0 -> Linear(in,128) -> BN1) folded into w1/b1, then LeakyReLU(0.1)
    h = jnp.dot(x, w1_ref[...], preferred_element_type=jnp.float32) + b1_ref[...]
    h = jnp.maximum(h, 0.1 * h)

    # block 1: (Linear(128,64) -> BN2) folded into w2/b2, then LeakyReLU(0.1)
    h = jnp.dot(h.astype(jnp.bfloat16), w2_ref[...],
                preferred_element_type=jnp.float32) + b2_ref[...]
    h = jnp.maximum(h, 0.1 * h)

    # fused heads, transposed/lane-dense: (2, 64) contracted with (TILE, 64) -> (2, TILE)
    head = lax.dot_general(
        wh_ref[...], h.astype(jnp.bfloat16),
        dimension_numbers=(((1,), (1,)), ((), ())),
        preferred_element_type=jnp.float32,
    ) + bh_ref[...]

    # row 0: carb regression output (raw)
    out_ref[0:1, :] = head[0:1, :]
    # row 1: aux classifier, sigmoid on this row only.
    # approx reciprocal (EUP) trades ~1e-3 rel error for a free slot; use approx=False
    # if the aux head feeds a hard threshold near 0.5.
    out_ref[1:2, :] = pl.reciprocal(1.0 + jnp.exp(-head[1:2, :]), approx=True)


# ----------------------------------------------------------------------------- wrapper
def nutrition_predictor_forward(x, params, return_aux=False, tile=2048):
    """Pallas forward pass.  x: [N, input_dim] float32, params from fold_params()."""
    n, input_dim = x.shape
    x = x.astype(jnp.bfloat16)          # halve the dominant HBM stream (kernel used bf16 anyway)

    LANE = 128                          # lane width: multi-tile out blocks must be multiples
    SUB = 16                            # bf16 sublane packing

    tile_req = max(LANE, (int(tile) // LANE) * LANE)

    if n > tile_req:
        tile_rows = tile_req
        n_pad = pl.cdiv(n, tile_rows) * tile_rows
    elif n >= 2 * LANE:
        # Batch fits a single tile but is big enough to split: use >= 2 grid steps so the
        # "parallel" batch axis shards across both TensorCores on v7x (no-op on v5e/v6e).
        tile_rows = pl.cdiv(pl.cdiv(n, 2), LANE) * LANE
        n_pad = 2 * tile_rows
    else:
        tile_rows = pl.cdiv(n, SUB) * SUB
        n_pad = tile_rows

    if n_pad != n:
        x = jnp.pad(x, ((0, n_pad - n), (0, 0)))

    grid = (n_pad // tile_rows,)

    consts = (params["w1"], params["b1"], params["w2"], params["b2"],
              params["w_heads_t"], params["b_heads_t"])

    in_specs = [pl.BlockSpec((tile_rows, input_dim), lambda i: (i, 0))] + \
               [pl.BlockSpec(a.shape, lambda i: (0, 0)) for a in consts]

    out = pl.pallas_call(
        _nutrition_kernel,
        out_shape=jax.ShapeDtypeStruct((2, n_pad), jnp.float32),
        grid=grid,
        in_specs=in_specs,
        out_specs=pl.BlockSpec((2, tile_rows), lambda i: (0, i)),
        compiler_params=pltpu.CompilerParams(dimension_semantics=("parallel",)),
    )(x, *consts)

    carb = out[0, :n]                   # .squeeze(-1) as in the PyTorch forward
    if return_aux:
        return carb, out[1, :n]
    return carb


# ----------------------------------------------------------------------------- params
def _xavier_uniform(key, fan_in, fan_out):
    limit = jnp.sqrt(6.0 / (fan_in + fan_out))
    # PyTorch weight is [out, in]; store transposed [in, out] for x @ W.
    return jax.random.uniform(key, (fan_in, fan_out), jnp.float32, -limit, limit)


def init_raw_params(key, input_dim, hidden_dims=(128, 64)):
    """Raw module parameters (linear weights + BN affine/running stats), eval mode."""
    keys = jax.random.split(key, 16)
    h1, h2 = hidden_dims

    def bn(kg, kb, km, kv, dim):
        return {
            "gamma": 1.0 + 0.1 * jax.random.normal(kg, (dim,), jnp.float32),
            "beta": 0.1 * jax.random.normal(kb, (dim,), jnp.float32),
            "mean": 0.5 * jax.random.normal(km, (dim,), jnp.float32),
            "var": jax.random.uniform(kv, (dim,), jnp.float32, 0.5, 1.5),
        }

    return {
        "bn0": bn(keys[0], keys[1], keys[2], keys[3], input_dim),
        "bn1": bn(keys[4], keys[5], keys[6], keys[7], h1),
        "bn2": bn(keys[8], keys[9], keys[10], keys[11], h2),
        "w1": _xavier_uniform(keys[12], input_dim, h1), "b1": jnp.zeros((h1,), jnp.float32),
        "w2": _xavier_uniform(keys[13], h1, h2), "b2": jnp.zeros((h2,), jnp.float32),
        "w_out": _xavier_uniform(keys[14], h2, 1), "b_out": jnp.zeros((1,), jnp.float32),
        "w_aux": _xavier_uniform(keys[15], h2, 1), "b_aux": jnp.zeros((1,), jnp.float32),
    }


def fold_params(raw, eps=1e-5):
    """Fold BN (inference) into Linear weights, fuse + transpose the two heads, cast to bf16."""
    def scale_shift(bn):
        s = bn["gamma"] * lax.rsqrt(bn["var"] + eps)
        return s, bn["beta"] - bn["mean"] * s

    s0, sh0 = scale_shift(raw["bn0"])
    s1, sh1 = scale_shift(raw["bn1"])
    s2, sh2 = scale_shift(raw["bn2"])

    w1 = s0[:, None] * raw["w1"] * s1[None, :]
    b1 = (sh0 @ raw["w1"] + raw["b1"]) * s1 + sh1
    w2 = raw["w2"] * s2[None, :]
    b2 = raw["b2"] * s2 + sh2

    # Fused + transposed heads: row 0 = carb regression, row 1 = aux classifier.
    w_heads_t = jnp.concatenate([raw["w_out"], raw["w_aux"]], axis=1).T        # [2, h2]
    b_heads_t = jnp.concatenate([raw["b_out"], raw["b_aux"]], axis=0).reshape(2, 1)

    return {
        "w1": w1.astype(jnp.bfloat16), "b1": b1.reshape(1, -1).astype(jnp.float32),
        "w2": w2.astype(jnp.bfloat16), "b2": b2.reshape(1, -1).astype(jnp.float32),
        "w_heads_t": w_heads_t.astype(jnp.bfloat16),
        "b_heads_t": b_heads_t.astype(jnp.float32),
    }


# ----------------------------------------------------------------------------- references
def reference_forward_f32(x, raw, eps=1e-5):
    """Pure-f32 reference mirroring the PyTorch eval-mode forward."""
    def bn(v, p):
        return (v - p["mean"]) * lax.rsqrt(p["var"] + eps) * p["gamma"] + p["beta"]

    h = bn(x, raw["bn0"])
    h = h @ raw["w1"] + raw["b1"]
    h = bn(h, raw["bn1"])
    h = jnp.where(h > 0, h, 0.1 * h)
    h = h @ raw["w2"] + raw["b2"]
    h = bn(h, raw["bn2"])
    h = jnp.where(h > 0, h, 0.1 * h)
    carb = (h @ raw["w_out"] + raw["b_out"]).squeeze(-1)
    aux = jax.nn.sigmoid(h @ raw["w_aux"] + raw["b_aux"]).squeeze(-1)
    return carb, aux


def reference_forward_folded(x, p):
    """Reference that mirrors the kernel's folded/bf16 math (for tight tolerance checks)."""
    h = jnp.dot(x.astype(jnp.bfloat16), p["w1"], preferred_element_type=jnp.float32) + p["b1"]
    h = jnp.maximum(h, 0.1 * h)
    h = jnp.dot(h.astype(jnp.bfloat16), p["w2"], preferred_element_type=jnp.float32) + p["b2"]
    h = jnp.maximum(h, 0.1 * h)
    head = jnp.dot(h.astype(jnp.bfloat16), p["w_heads_t"].T,
                   preferred_element_type=jnp.float32) + p["b_heads_t"].reshape(1, 2)
    return head[:, 0], jax.nn.sigmoid(head[:, 1])


# ----------------------------------------------------------------------------- main
if __name__ == "__main__":
    key = jax.random.PRNGKey(0)
    k_x, k_p, k_x2 = jax.random.split(key, 3)

    batch, input_dim = 8, 32
    x = jax.random.normal(k_x, (batch, input_dim), jnp.float32)

    raw = init_raw_params(k_p, input_dim, hidden_dims=(128, 64))
    params = fold_params(raw)

    carb, aux = nutrition_predictor_forward(x, params, return_aux=True)
    carb = jax.block_until_ready(carb)
    aux = jax.block_until_ready(aux)
    assert carb.shape == (batch,) and aux.shape == (batch,)

    # Tight check vs. a reference that uses the same folded weights / bf16 matmul inputs.
    carb_e, aux_e = reference_forward_folded(x, params)
    assert jnp.allclose(carb, carb_e, atol=5e-3, rtol=5e-3)
    assert jnp.allclose(aux, aux_e, atol=5e-3, rtol=5e-3)

    # Loose sanity check vs. the pure-f32 PyTorch-style reference (bf16 matmul rounding).
    carb_f, aux_f = reference_forward_f32(x, raw)
    assert jnp.allclose(carb, carb_f, atol=2e-1, rtol=1e-1)
    assert jnp.allclose(aux, aux_f, atol=2e-1, rtol=1e-1)

    # carb-only path (return_aux=False) must match.
    carb_only = jax.block_until_ready(nutrition_predictor_forward(x, params))
    assert jnp.allclose(carb_only, carb, atol=1e-6, rtol=1e-6)

    # Multi-tile / dual-TensorCore path: batch that splits into two 128-lane-aligned tiles.
    batch2 = 300
    x2 = jax.random.normal(k_x2, (batch2, input_dim), jnp.float32)
    carb2, aux2 = nutrition_predictor_forward(x2, params, return_aux=True)
    carb2 = jax.block_until_ready(carb2)
    aux2 = jax.block_until_ready(aux2)
    carb2_e, aux2_e = reference_forward_folded(x2, params)
    assert carb2.shape == (batch2,) and aux2.shape == (batch2,)
    assert jnp.allclose(carb2, carb2_e, atol=5e-3, rtol=5e-3)
    assert jnp.allclose(aux2, aux2_e, atol=5e-3, rtol=5e-3)

    print("KERNEL_OK")
</pallas_src>

<mosaic_0001>
module attributes {stable_mosaic.version = 11 : i64} {
  func.func @_nutrition_kernel(%arg0: i32, %arg1: memref<16x32xbf16, #tpu.memory_space<vmem>>, %arg2: memref<32x128xbf16, #tpu.memory_space<vmem>>, %arg3: memref<1x128xf32, #tpu.memory_space<vmem>>, %arg4: memref<128x64xbf16, #tpu.memory_space<vmem>>, %arg5: memref<1x64xf32, #tpu.memory_space<vmem>>, %arg6: memref<2x64xbf16, #tpu.memory_space<vmem>>, %arg7: memref<2x1xf32, #tpu.memory_space<vmem>>, %arg8: memref<2x16xf32, #tpu.memory_space<vmem>>) attributes {dimension_semantics = [#tpu.dimension_semantics<parallel>], iteration_bounds = array<i64: 1>, scalar_prefetch = 0 : i64, scratch_operands = 0 : i64, tpu.core_type = #tpu.core_type<tc>, window_params = [{transform_indices = @transform_0, window_bounds = array<i64: 16, 32>}, {pipeline_mode = #tpu.pipeline_mode<synchronous>, transform_indices = @transform_1, window_bounds = array<i64: 32, 128>}, {pipeline_mode = #tpu.pipeline_mode<synchronous>, transform_indices = @transform_2, window_bounds = array<i64: 1, 128>}, {pipeline_mode = #tpu.pipeline_mode<synchronous>, transform_indices = @transform_3, window_bounds = array<i64: 128, 64>}, {pipeline_mode = #tpu.pipeline_mode<synchronous>, transform_indices = @transform_4, window_bounds = array<i64: 1, 64>}, {pipeline_mode = #tpu.pipeline_mode<synchronous>, transform_indices = @transform_5, window_bounds = array<i64: 2, 64>}, {pipeline_mode = #tpu.pipeline_mode<synchronous>, transform_indices = @transform_6, window_bounds = array<i64: 2, 1>}, {transform_indices = @transform_7, window_bounds = array<i64: 2, 16>}]} {
    %c0 = arith.constant 0 : index
    %c0_0 = arith.constant 0 : index
    %0 = vector.load %arg1[%c0, %c0_0] : memref<16x32xbf16, #tpu.memory_space<vmem>>, vector<16x32xbf16>
    %c0_1 = arith.constant 0 : index
    %c0_2 = arith.constant 0 : index
    %1 = vector.load %arg2[%c0_1, %c0_2] : memref<32x128xbf16, #tpu.memory_space<vmem>>, vector<32x128xbf16>
    %cst = arith.constant dense<0.000000e+00> : vector<16x128xf32>
    %2 = tpu.matmul %0, %1, %cst {dimension_numbers = #tpu.dot_dimension_numbers<[1], [0], [0], [1], [0, 0, 1, 1], [], []>} : vector<16x32xbf16>, vector<32x128xbf16>, vector<16x128xf32> -> vector<16x128xf32>
    %c0_3 = arith.constant 0 : index
    %c0_4 = arith.constant 0 : index
    %3 = vector.load %arg3[%c0_3, %c0_4] : memref<1x128xf32, #tpu.memory_space<vmem>>, vector<1x128xf32>
    %4 = vector.broadcast %3 : vector<1x128xf32> to vector<16x128xf32>
    %5 = arith.addf %2, %4 : vector<16x128xf32>
    %cst_5 = arith.constant 1.000000e-01 : f32
    %6 = vector.broadcast %cst_5 : f32 to vector<16x128xf32>
    %7 = arith.mulf %6, %5 : vector<16x128xf32>
    %8 = arith.maximumf %5, %7 : vector<16x128xf32>
    %9 = arith.truncf %8 : vector<16x128xf32> to vector<16x128xbf16>
    %c0_6 = arith.constant 0 : index
    %c0_7 = arith.constant 0 : index
    %10 = vector.load %arg4[%c0_6, %c0_7] : memref<128x64xbf16, #tpu.memory_space<vmem>>, vector<128x64xbf16>
    %cst_8 = arith.constant dense<0.000000e+00> : vector<16x64xf32>
    %11 = tpu.matmul %9, %10, %cst_8 {dimension_numbers = #tpu.dot_dimension_numbers<[1], [0], [0], [1], [0, 0, 1, 1], [], []>} : vector<16x128xbf16>, vector<128x64xbf16>, vector<16x64xf32> -> vector<16x64xf32>
    %c0_9 = arith.constant 0 : index
    %c0_10 = arith.constant 0 : index
    %12 = vector.load %arg5[%c0_9, %c0_10] : memref<1x64xf32, #tpu.memory_space<vmem>>, vector<1x64xf32>
    %13 = vector.broadcast %12 : vector<1x64xf32> to vector<16x64xf32>
    %14 = arith.addf %11, %13 : vector<16x64xf32>
    %cst_11 = arith.constant 1.000000e-01 : f32
    %15 = vector.broadcast %cst_11 : f32 to vector<16x64xf32>
    %16 = arith.mulf %15, %14 : vector<16x64xf32>
    %17 = arith.maximumf %14, %16 : vector<16x64xf32>
    %c0_12 = arith.constant 0 : index
    %c0_13 = arith.constant 0 : index
    %18 = vector.load %arg6[%c0_12, %c0_13] : memref<2x64xbf16, #tpu.memory_space<vmem>>, vector<2x64xbf16>
    %19 = arith.truncf %17 : vector<16x64xf32> to vector<16x64xbf16>
    %cst_14 = arith.constant dense<0.000000e+00> : vector<2x16xf32>
    %20 = tpu.matmul %18, %19, %cst_14 {dimension_numbers = #tpu.dot_dimension_numbers<[1], [1], [0], [0], [0, 0, 1, 0], [], []>} : vector<2x64xbf16>, vector<16x64xbf16>, vector<2x16xf32> -> vector<2x16xf32>
    %c0_15 = arith.constant 0 : index
    %c0_16 = arith.constant 0 : index
    %21 = vector.load %arg7[%c0_15, %c0_16] : memref<2x1xf32, #tpu.memory_space<vmem>>, vector<2x1xf32>
    %22 = vector.broadcast %21 : vector<2x1xf32> to vector<2x16xf32>
    %23 = arith.addf %20, %22 : vector<2x16xf32>
    %24 = vector.extract_strided_slice %23 {offsets = [0, 0], sizes = [1, 16], strides = [1, 1]} : vector<2x16xf32> to vector<1x16xf32>
    %c0_17 = arith.constant 0 : index
    %c0_18 = arith.constant 0 : index
    %25 = vector.load %arg8[%c0_17, %c0_18] : memref<2x16xf32, #tpu.memory_space<vmem>>, vector<1x16xf32>
    tpu.vector_store %arg8[%c0_17, %c0_18], %24 {strides = array<i32>} : memref<2x16xf32, #tpu.memory_space<vmem>>, vector<1x16xf32>,
    %26 = vector.extract_strided_slice %23 {offsets = [1, 0], sizes = [1, 16], strides = [1, 1]} : vector<2x16xf32> to vector<1x16xf32>
    %cst_19 = arith.constant 0.000000e+00 : f32
    %27 = vector.broadcast %cst_19 : f32 to vector<1x16xf32>
    %28 = arith.subf %27, %26 : vector<1x16xf32>
    %29 = math.exp %28 : vector<1x16xf32>
    %cst_20 = arith.constant 1.000000e+00 : f32
    %30 = vector.broadcast %cst_20 : f32 to vector<1x16xf32>
    %31 = arith.addf %30, %29 : vector<1x16xf32>
    %32 = tpu.reciprocal %31 {approx = true} : vector<1x16xf32> -> vector<1x16xf32>
    %c1 = arith.constant 1 : index
    %c0_21 = arith.constant 0 : index
    %33 = vector.load %arg8[%c1, %c0_21] : memref<2x16xf32, #tpu.memory_space<vmem>>, vector<1x16xf32>
    tpu.vector_store %arg8[%c1, %c0_21], %32 {strides = array<i32>} : memref<2x16xf32, #tpu.memory_space<vmem>>, vector<1x16xf32>,
    return
  }
  func.func @transform_0(%arg0: i32) -> (i32, i32) {
    %c0_i32 = arith.constant 0 : i32
    %c0_i32_0 = arith.constant 0 : i32
    return %arg0, %c0_i32 : i32, i32
  }
  func.func @transform_1(%arg0: i32) -> (i32, i32) {
    %c0_i32 = arith.constant 0 : i32
    %c0_i32_0 = arith.constant 0 : i32
    %c0_i32_1 = arith.constant 0 : i32
    return %c0_i32, %c0_i32_0 : i32, i32
  }
  func.func @transform_2(%arg0: i32) -> (i32, i32) {
    %c0_i32 = arith.constant 0 : i32
    %c0_i32_0 = arith.constant 0 : i32
    %c0_i32_1 = arith.constant 0 : i32
    return %c0_i32, %c0_i32_0 : i32, i32
  }
  func.func @transform_3(%arg0: i32) -> (i32, i32) {
    %c0_i32 = arith.constant 0 : i32
    %c0_i32_0 = arith.constant 0 : i32
    %c0_i32_1 = arith.constant 0 : i32
    return %c0_i32, %c0_i32_0 : i32, i32
  }
  func.func @transform_4(%arg0: i32) -> (i32, i32) {
    %c0_i32 = arith.constant 0 : i32
    %c0_i32_0 = arith.constant 0 : i32
    %c0_i32_1 = arith.constant 0 : i32
    return %c0_i32, %c0_i32_0 : i32, i32
  }
  func.func @transform_5(%arg0: i32) -> (i32, i32) {
    %c0_i32 = arith.constant 0 : i32
    %c0_i32_0 = arith.constant 0 : i32
    %c0_i32_1 = arith.constant 0 : i32
    return %c0_i32, %c0_i32_0 : i32, i32
  }
  func.func @transform_6(%arg0: i32) -> (i32, i32) {
    %c0_i32 = arith.constant 0 : i32
    %c0_i32_0 = arith.constant 0 : i32
    %c0_i32_1 = arith.constant 0 : i32
    return %c0_i32, %c0_i32_0 : i32, i32
  }
  func.func @transform_7(%arg0: i32) -> (i32, i32) {
    %c0_i32 = arith.constant 0 : i32
    %c0_i32_0 = arith.constant 0 : i32
    return %c0_i32, %arg0 : i32, i32
  }
}

</mosaic_0001>

<bundles_post_ra>
// kernel: tpu_custom_call.1
= control target key start
LH: loop header
LB: loop body
LE: loop exit
PB: predicated region body
PF: predicated region fallthrough
CT: control target
= control target key end

     0   :  { %s399_s0 = inlined_call_operand.vmem [shape: bf16[16,32], index: 0, kind: input, shape index: {}]   ;;  %s400_s1 = inlined_call_operand.vmem [shape: bf16[32,128], index: 1, kind: input, shape index: {}]   ;;  %s401_s2 = inlined_call_operand.vmem [shape: f32[1,128], index: 2, kind: input, shape index: {}]   ;;  %s402_s3 = inlined_call_operand.vmem [shape: bf16[128,64], index: 3, kind: input, shape index: {}]   ;;  %s403_s4 = inlined_call_operand.vmem [shape: f32[1,64], index: 4, kind: input, shape index: {}]   ;;  %s404_s5 = inlined_call_operand.vmem [shape: bf16[2,64], index: 5, kind: input, shape index: {}]   ;;  %s405_s6 = inlined_call_operand.vmem [shape: f32[2,1], index: 6, kind: input, shape index: {}]   ;;  %s406_s7 = inlined_call_operand.hbm [shape: f32[2,16], index: 7, kind: output, shape index: {}]  }
   0x1   :  { %v265_v0 = vld [vmem:[%s400_s1 + $0x8] sm:$0xff]  ;;  %v273_v1 = vld [vmem:[%s402_s3 + $0x38] sm:$0xff]  ;;  %v264_v2 = vld [vmem:[%s400_s1] sm:$0xff] }
   0x2   :  { %65 = vmatpush.bf16.msra.mxu0 %v265_v0  ;;  %146 = vmatpush.bf16.msra.mxu1 %v273_v1  ;;  %v272_v3 = vld [vmem:[%s402_s3 + $0x30] sm:$0xff] }
   0x3   :  { %12 = vsyncpa [#allocation3], 0  ;;  %v263_v4 = vld [vmem:[%s399_s0] sm:$0xff]  ;;  %vm55_vm0 = vcmask 261120   ;;  %v271_v5 = vld [vmem:[%s402_s3 + $0x28] sm:$0xff]  ;;  %v309_v22 = vmov 0  }
   0x4   :  { %v270_v6 = vld [vmem:[%s402_s3 + $0x20] sm:$0xff]  ;;  %v269_v7 = vld [vmem:[%s402_s3 + $0x18] sm:$0xff]  ;;  %v268_v8 = vld [vmem:[%s402_s3 + $0x10] sm:$0xff]  ;;  %276 = vset.pattern.permute.xlu0 %v309_v22  ;;  %vm172_vm1 = vcmask 523264   ;;  %vm192_vm2 = vcmask 122880   ;;  %s208_s29 = sshll.u32 %s406_s7, 4  ;;  %s209_s29 = int_to_ptr.hbm [resolvable:$true] %s208_s29 }
   0x5   :  { %v267_v9 = vld [vmem:[%s402_s3 + $0x8] sm:$0xff]  ;;  %v266_v10 = vld [vmem:[%s402_s3] sm:$0xff]  ;;  %vm199_vm3 = vcmask 123905  }
   0x6   :  { %66 = vmatpush.bf16.msra.mxu0 %v264_v2  ;;  %147 = vmatpush.bf16.msra.mxu1 %v272_v3  ;;  %v277_v12 = vld [vmem:[%s401_s2] ss:$0 sm:$0xff] }
   0x7   :  { %v166_v21 = vld [vmem:[%s405_s6] sm:$0x3] }
   0x8   :  { %169 = vperm.xlu0 %276, %v166_v21   ;;  %v278_v24 = vld [vmem:[%s403_s4] ss:$0 sm:$0xff]  ;;  %s310_s4 = smov [#allocation2]  }
   0x9   :  { %229 = vmatmul.msk.bf16.vlgmr.msra.gmra.mxu0 %vm55_vm0, %v263_v4  ;;  %v164_v34 = vld [vmem:[%s404_s5] sm:$0x1]  ;;  %s206_s26 = sshll.u32 %s310_s4, 4  ;;  %s207_s26 = int_to_ptr.vmem [resolvable:$true] %s206_s26 }
   0xa   :  { %148 = vmatpush.bf16.msra.mxu1 %v271_v5 }
   0xe   :  { %149 = vmatpush.bf16.msra.mxu1 %v270_v6 }
  0x12   :  { %150 = vmatpush.bf16.msra.mxu1 %v269_v7 }
  0x16   :  { %151 = vmatpush.bf16.msra.mxu1 %v268_v8 }
  0x1a   :  { %152 = vmatpush.bf16.msra.mxu1 %v267_v9 }
  0x1e   :  { %153 = vmatpush.bf16.msra.mxu1 %v266_v10 }
  0x7a   :  { %v170_v35 = vpop.permute.xlu0 %169 }
  0x86   :  { %v68_v11 = vpop.f32.mrf.mxu0 }
  0x87   :  { %v69_v13 = vadd.f32 %v277_v12, %v68_v11 }
  0x89   :  { %v73_v15 = vmul.f32 0.1, %v69_v13 }
  0x8b   :  { %v75_v18 = vmax.f32 %v69_v13, %v73_v15 }
  0x8e   :  { %v70_v14 = vpop.f32.mrf.mxu0 }
  0x8f   :  { %v71_v16 = vadd.f32 %v277_v12, %v70_v14 }
  0x91   :  { %v74_v17 = vmul.f32 0.1, %v71_v16 }
  0x93   :  { %v76_v19 = vmax.f32 %v71_v16, %v74_v17 }
  0x95   :  { %v77_v20 = vpack.c.bf16 %v76_v19, %v75_v18 }
  0x97   :  { %154 = vmatmul.bf16.vlgmr.msra.gmra.mxu1 %v77_v20 }
 0x114   :  { %v155_v23 = vpop.f32.mrf.mxu1 }
 0x115   :  { %v156_v25 = vadd.f32 %v278_v24, %v155_v23 }
 0x117   :  { %v160_v27 = vmul.f32 0.1, %v156_v25 }
 0x119   :  { %v162_v30 = vmax.f32 %v156_v25, %v160_v27 }
 0x11c   :  { %v157_v26 = vpop.f32.mrf.mxu1 }
 0x11d   :  { %v158_v28 = vadd.f32 %v278_v24, %v157_v26 }
 0x11f   :  { %v161_v29 = vmul.f32 0.1, %v158_v28 }
 0x121   :  { %v163_v31 = vmax.f32 %v158_v28, %v161_v29 }
 0x123   :  { %v165_v32 = vpack.c.bf16 %v163_v31, %v162_v30 }
 0x125   :  { %v177_v33 = vsel %vm172_vm1, %v165_v32, 0 }
 0x126   :  { %186 = vmatpush.bf16.xpose.msra.mxu2 %v177_v33 }
 0x12d   :  { %262 = vmatmul.msk.bf16.vlgmr.msra.gmra.mxu2 %vm172_vm1, %v164_v34 }
 0x1b0   :  { %v188_v36 = vpop.f32.mrf.mxu2 }
 0x1b1   :  { %v189_v37 = vadd.f32 %v188_v36, %v170_v35 }
 0x1b3   :  { %193 = vst.msk [vmem:[#allocation2] sm:$0x1] %vm192_vm2, %v189_v37  ;;  %v194_v38 = vsub.f32 0.0, %v189_v37 }
 0x1b5   :  { %v195_v39 = vmul.f32 1.442695, %v194_v38 }
 0x1b7   :  { %279 = vpow2.f32 %v195_v39 }
 0x1b8   :  { %v190_v40 = vpop.f32.mrf.mxu2 }
 0x1bd   :  { %v280_v41 = vpop.eup %279 }
 0x1be   :  { %v197_v42 = vadd.f32 1.0, %v280_v41 }
 0x1c0   :  { %281 = vrcp.f32 %v197_v42 }
 0x1c6   :  { %v282_v43 = vpop.eup %281 }
 0x1c7   :  { %200 = vst.msk [vmem:[#allocation2] sm:$0x2] %vm199_vm3, %v282_v43 }
 0x1c8   :  { %211 = dma.vmem_to_hbm [thread:$0]  %s207_s26, 32, %s209_s29, [#allocation3]  }
 0x1c9   :  { %307 = dma.done.wait [#allocation3], 32  }
 0x1ca   :  { %308 = vsyncadd [#allocation3], 4294967264 }
 0x1cb   :  { %216 = vsyncpa [#allocation3], 1 }

</bundles_post_ra>
